<compile_context>
chip_gen: v7x
topology: tpu7x:2x2x1
jax: 0.10.0
libtpu: 0.0.40
codegen_flags: <defaults>
</compile_context>

<pallas_src>
import functools

import jax
import jax.numpy as jnp
from jax.experimental import pallas as pl
from jax.experimental.pallas import tpu as pltpu

LANES = 128
SUBLANES = 8
DEFAULT_MAX_BLOCK_ROWS = 16384          # upper bound; actual tile from VMEM budget
_INPUT_VMEM_BUDGET = 24 * 1024 * 1024   # double-buffered input tiles, all operands


def _round_up(x, m):
    return -(-x // m) * m


def _fused_loss_kernel(*refs, modes, block_rows, inner_len, total_rows, needs_mask):
    """Fused per-element losses + streaming reduction.

    refs = (pred_ref, t_ref_0..t_ref_{L-1}, out_ref_0..out_ref_{L-1},
            acc_ref_0..acc_ref_{L-1})

    Grid is (num_splits, inner_len):
      * axis 0 ("parallel")  -> per-TensorCore partial sums (v7x megacore),
      * axis 1 ("arbitrary") -> sequential streaming reduction.

    Each acc_ref is a vreg-sized (8, 128) f32 accumulator resident across the
    reduction axis; the expensive cross-lane reduce happens exactly once per
    core, in the finalize branch.
    """
    num_losses = len(modes)
    pred_ref = refs[0]
    t_refs = refs[1:1 + num_losses]
    out_refs = refs[1 + num_losses:1 + 2 * num_losses]
    acc_refs = refs[1 + 2 * num_losses:]

    c = pl.program_id(0)   # core split (parallel)
    i = pl.program_id(1)   # reduction step (arbitrary)

    @pl.when(i == 0)
    def _init():
        for acc in acc_refs:
            acc[...] = jnp.zeros_like(acc)

    if needs_mask:
        # Valid rows in this (possibly partial / duplicated) block; <= 0 for
        # clamped duplicate blocks of an uneven core split.
        gblock = c * inner_len + i
        valid_rows = total_rows - gblock * block_rows
        row_ids = jax.lax.broadcasted_iota(jnp.int32, (block_rows, LANES), 0)
        mask = row_ids < valid_rows

    folds = block_rows // SUBLANES
    p = pred_ref[...].astype(jnp.float32)
    for mode, t_ref, acc in zip(modes, t_refs, acc_refs):
        d = p - t_ref[...].astype(jnp.float32)
        if mode == "mse":
            e = d * d
        elif mode == "l1":
            e = jnp.abs(d)
        else:
            raise ValueError(f"unknown loss mode {mode!r}")
        if needs_mask:
            e = jnp.where(mask, e, 0.0)
        # Layout-preserving fold to a single (8, 128) vreg: VPU adds only,
        # hidden under the input DMA.
        acc[...] += e.reshape(folds, SUBLANES, LANES).sum(axis=0)

    @pl.when(i == pl.num_programs(1) - 1)
    def _finalize():
        for out_ref, acc in zip(out_refs, acc_refs):
            out_ref[...] = jnp.sum(acc[...]).reshape(1, 1)


def _fused_mean_losses_impl(pred, targets, modes, *,
                            max_block_rows=DEFAULT_MAX_BLOCK_ROWS):
    """Mean-reduction losses for several (mode, target) pairs in one HBM pass.

    Returns a tuple of scalar f32 means, one per loss term.
    """
    targets = tuple(targets)
    modes = tuple(modes)
    assert len(targets) == len(modes) and len(modes) >= 1
    for t in targets:
        assert t.shape == pred.shape, "pred/target shape mismatch"

    n = int(pred.size)
    assert n > 0, "empty input"
    num_losses = len(modes)

    rows = -(-n // LANES)

    # Tile sizing: as many 128-lane rows per step as the VMEM budget allows
    # (double-buffered, all operands), multiple of 32 rows (safe sublane
    # packing for f32 / bf16 / int8).
    item_bytes = sum(jnp.dtype(a.dtype).itemsize for a in (pred,) + targets)
    per_row_bytes = 2 * LANES * item_bytes
    cap_rows = max(32, (_INPUT_VMEM_BUDGET // per_row_bytes) // 32 * 32)
    block_rows = min(int(max_block_rows), cap_rows, _round_up(rows, 32))
    block_rows = max(32, (block_rows // 32) * 32)

    total_blocks = -(-rows // block_rows)
    num_splits = 2 if total_blocks >= 2 else 1   # both TCs on v7x; no-op on 1-TC chips
    inner_len = -(-total_blocks // num_splits)
    needs_mask = (num_splits * inner_len * block_rows) != rows

    def prep(x):
        flat = x.reshape(-1)
        rem = n % LANES
        if rem:
            # TODO(synk): handle the sub-128 remainder with a tiny epilogue
            # instead of this whole-array pad/copy.
            flat = jnp.pad(flat, (0, LANES - rem))
        return flat.reshape(rows, LANES)

    kernel = functools.partial(
        _fused_loss_kernel, modes=modes, block_rows=block_rows,
        inner_len=inner_len, total_rows=rows, needs_mask=needs_mask)

    max_block = total_blocks - 1

    def in_index_map(c, i):
        # Clamp trailing (duplicated) blocks of an uneven split onto the last
        # real block: their contribution is masked to zero in the kernel, and
        # the repeated block index lets the pipeline skip the re-fetch.
        return (jnp.minimum(c * inner_len + i, max_block), 0)

    in_specs = [pl.BlockSpec((block_rows, LANES), in_index_map)
                for _ in range(1 + num_losses)]
    out_specs = [pl.BlockSpec((1, 1), lambda c, i: (c, 0))
                 for _ in range(num_losses)]
    out_shape = tuple(jax.ShapeDtypeStruct((num_splits, 1), jnp.float32)
                      for _ in range(num_losses))
    scratch_shapes = [pltpu.VMEM((SUBLANES, LANES), jnp.float32)
                      for _ in range(num_losses)]

    vmem_limit = (per_row_bytes * block_rows
                  + 4 * num_losses * SUBLANES * LANES * 4
                  + (8 << 20))
    vmem_limit = int(max(16 << 20, min(vmem_limit, 48 << 20)))

    outs = pl.pallas_call(
        kernel,
        out_shape=out_shape,
        grid_spec=pltpu.PrefetchScalarGridSpec(
            num_scalar_prefetch=0,
            grid=(num_splits, inner_len),
            in_specs=in_specs,
            out_specs=out_specs,
            scratch_shapes=scratch_shapes,
        ),
        compiler_params=pltpu.CompilerParams(
            dimension_semantics=("parallel", "arbitrary"),
            vmem_limit_bytes=vmem_limit,
        ),
        # TODO(synk): if an xprof trace shows DMA gaps at step boundaries on
        # v7x, add pipeline_mode=pl.Buffered(3) to the input BlockSpecs.
    )(prep(pred), *[prep(t) for t in targets])

    inv_n = 1.0 / float(n)
    return tuple(jnp.sum(o) * inv_n for o in outs)


# ---- custom VJP: forward = fused Pallas kernel, backward = trivial elementwise ----

@functools.partial(jax.custom_vjp, nondiff_argnums=(2,))
def _fused_mean_losses(pred, targets, modes):
    return _fused_mean_losses_impl(pred, targets, modes)


def _fused_mean_losses_fwd(pred, targets, modes):
    return _fused_mean_losses_impl(pred, targets, modes), (pred, targets)


def _fused_mean_losses_bwd(modes, res, gs):
    pred, targets = res
    inv_n = 1.0 / float(pred.size)
    d_pred = jnp.zeros(pred.shape, jnp.float32)
    d_targets = []
    for g, t, mode in zip(gs, targets, modes):
        d = pred.astype(jnp.float32) - t.astype(jnp.float32)
        if mode == "mse":
            gi = (g * (2.0 * inv_n)) * d
        elif mode == "l1":
            gi = (g * inv_n) * jnp.sign(d)
        else:
            raise ValueError(f"unknown loss mode {mode!r}")
        d_pred = d_pred + gi
        d_targets.append((-gi).astype(t.dtype))
    return d_pred.astype(pred.dtype), tuple(d_targets)


_fused_mean_losses.defvjp(_fused_mean_losses_fwd, _fused_mean_losses_bwd)


# ---- loss modules -----------------------------------------------------------

class _ElementwiseMeanLoss:
    """Base for fusable elementwise mean-reduction losses."""

    mode = None  # "mse" | "l1"

    def __call__(self, pred, target):
        return _fused_mean_losses(pred, (target,), (self.mode,))[0]


class MSELoss(_ElementwiseMeanLoss):
    """Equivalent of nn.MSELoss() (mean reduction)."""
    mode = "mse"


class L1Loss(_ElementwiseMeanLoss):
    """Equivalent of nn.L1Loss() (mean reduction)."""
    mode = "l1"


class LossWrapper:
    """JAX/Pallas port of src/losses/loss_wrapper.py::LossWrapper.

    When every loss term exposes a `.mode` attribute (MSELoss / L1Loss above),
    all terms are fused into a single pallas_call so `pred` is streamed from
    HBM exactly once.  Otherwise falls back to per-term calls.
    """

    def __init__(self, loss_func_list, loss_weight_list):
        assert len(loss_func_list) == len(loss_weight_list), (
            "length of loss function list should match the length of loss weight list"
        )
        self.loss_func_list = list(loss_func_list)
        self.loss_weight_list = list(loss_weight_list)
        self.num_meter = len(self.loss_func_list)
        if len(self.loss_func_list) == 1:
            self.loss_weight_list = [1.0]

    def __call__(self, pred, targets):
        assert len(self.loss_func_list) == len(targets), (
            "length of loss function list should match the length of targets"
        )

        fusable = all(
            getattr(f, "mode", None) is not None for f in self.loss_func_list
        )

        if fusable:
            modes = tuple(f.mode for f in self.loss_func_list)
            means = _fused_mean_losses(pred, tuple(targets), modes)
        else:
            means = tuple(
                f(pred, t) for f, t in zip(self.loss_func_list, targets)
            )

        loss = 0.0
        loss_list = []
        for mean, weight in zip(means, self.loss_weight_list):
            loss_item = mean * weight
            loss = loss + loss_item
            # .detach() -> stop_gradient
            loss_list.append(jax.lax.stop_gradient(loss_item))
        return loss, tuple(loss_list), jax.lax.stop_gradient(pred)


if __name__ == "__main__":
    key = jax.random.PRNGKey(0)
    (k_pred, k_t0, k_t1, k_p2, k_t2, k_p3, k_t3a, k_t3b) = jax.random.split(key, 8)

    # --- Multi-loss training case: NCHW prediction + two same-shape targets ---
    pred = jax.random.normal(k_pred, (2, 4, 16, 16), dtype=jnp.float32)
    t0 = jax.random.normal(k_t0, (2, 4, 16, 16), dtype=jnp.float32)
    t1 = jax.random.normal(k_t1, (2, 4, 16, 16), dtype=jnp.float32)

    wrapper = LossWrapper(
        loss_func_list=[MSELoss(), L1Loss()],
        loss_weight_list=[0.7, 0.3],
    )
    loss, loss_list, pred_out = wrapper(pred, [t0, t1])
    jax.block_until_ready(loss)
    jax.block_until_ready(loss_list)
    jax.block_until_ready(pred_out)

    ref_mse = jnp.mean((pred - t0) ** 2) * 0.7
    ref_l1 = jnp.mean(jnp.abs(pred - t1)) * 0.3
    assert jnp.allclose(loss_list[0], ref_mse, rtol=1e-5, atol=1e-6)
    assert jnp.allclose(loss_list[1], ref_l1, rtol=1e-5, atol=1e-6)
    assert jnp.allclose(loss, ref_mse + ref_l1, rtol=1e-5, atol=1e-6)
    assert pred_out.shape == pred.shape

    # --- Gradient check (custom VJP; backward is plain-JAX elementwise) ---
    def kernel_loss(p):
        l, _, _ = wrapper(p, [t0, t1])
        return l

    def ref_loss(p):
        return 0.7 * jnp.mean((p - t0) ** 2) + 0.3 * jnp.mean(jnp.abs(p - t1))

    g_kernel = jax.grad(kernel_loss)(pred)
    g_ref = jax.grad(ref_loss)(pred)
    jax.block_until_ready(g_kernel)
    assert jnp.allclose(g_kernel, g_ref, rtol=1e-5, atol=1e-6)

    # --- Unaligned size (exercises the <128 remainder pad) + single loss ---
    p2 = jax.random.normal(k_p2, (3, 5, 7), dtype=jnp.float32)
    t2 = jax.random.normal(k_t2, (3, 5, 7), dtype=jnp.float32)
    single = LossWrapper([MSELoss()], [0.123])   # weight overridden to 1.0
    l2, ll2, _ = single(p2, [t2])
    jax.block_until_ready(l2)
    ref2 = jnp.mean((p2 - t2) ** 2)
    assert jnp.allclose(l2, ref2, rtol=1e-5, atol=1e-6)
    assert jnp.allclose(ll2[0], ref2, rtol=1e-5, atol=1e-6)

    # --- Multi-block path: forced small tile -> 2-way core split, odd block
    #     count (clamped duplicate block) and a partial, masked tail block. ---
    p3 = jax.random.normal(k_p3, (80, 256), dtype=jnp.float32)
    t3a = jax.random.normal(k_t3a, (80, 256), dtype=jnp.float32)
    t3b = jax.random.normal(k_t3b, (80, 256), dtype=jnp.float32)
    m_mse, m_l1 = _fused_mean_losses_impl(
        p3, (t3a, t3b), ("mse", "l1"), max_block_rows=64)
    jax.block_until_ready(m_mse)
    assert jnp.allclose(m_mse, jnp.mean((p3 - t3a) ** 2), rtol=1e-4, atol=1e-6)
    assert jnp.allclose(m_l1, jnp.mean(jnp.abs(p3 - t3b)), rtol=1e-4, atol=1e-6)

    print("KERNEL_OK")
</pallas_src>

<mosaic_0001>
module attributes {stable_mosaic.version = 11 : i64} {
  func.func @_fused_loss_kernel(%arg0: i32, %arg1: i32, %arg2: memref<32x128xf32, #tpu.memory_space<vmem>>, %arg3: memref<32x128xf32, #tpu.memory_space<vmem>>, %arg4: memref<32x128xf32, #tpu.memory_space<vmem>>, %arg5: memref<1x1xf32, #tpu.memory_space<vmem>>, %arg6: memref<1x1xf32, #tpu.memory_space<vmem>>, %arg7: memref<8x128xf32, #tpu.memory_space<vmem>>, %arg8: memref<8x128xf32, #tpu.memory_space<vmem>>) attributes {dimension_semantics = [#tpu.dimension_semantics<parallel>, #tpu.dimension_semantics<arbitrary>], iteration_bounds = array<i64: 1, 1>, scalar_prefetch = 0 : i64, scratch_operands = 2 : i64, tpu.core_type = #tpu.core_type<tc>, window_params = [{transform_indices = @transform_0, window_bounds = array<i64: 32, 128>}, {transform_indices = @transform_1, window_bounds = array<i64: 32, 128>}, {transform_indices = @transform_2, window_bounds = array<i64: 32, 128>}, {transform_indices = @transform_3, window_bounds = array<i64: 1, 1>}, {transform_indices = @transform_4, window_bounds = array<i64: 1, 1>}]} {
    %c0_i32 = arith.constant 0 : i32
    %0 = arith.cmpi eq, %arg1, %c0_i32 : i32
    %1 = arith.extui %0 : i1 to i32
    %c0_i32_0 = arith.constant 0 : i32
    %2 = arith.cmpi ne, %1, %c0_i32_0 : i32
    scf.if %2 {
      %cst_19 = arith.constant 0.000000e+00 : f32
      %34 = vector.broadcast %cst_19 : f32 to vector<8x128xf32>
      %c0_20 = arith.constant 0 : index
      %c0_21 = arith.constant 0 : index
      %35 = vector.load %arg7[%c0_20, %c0_21] : memref<8x128xf32, #tpu.memory_space<vmem>>, vector<8x128xf32>
      tpu.vector_store %arg7[%c0_20, %c0_21], %34 {strides = array<i32>} : memref<8x128xf32, #tpu.memory_space<vmem>>, vector<8x128xf32>,
      %cst_22 = arith.constant 0.000000e+00 : f32
      %36 = vector.broadcast %cst_22 : f32 to vector<8x128xf32>
      %c0_23 = arith.constant 0 : index
      %c0_24 = arith.constant 0 : index
      %37 = vector.load %arg8[%c0_23, %c0_24] : memref<8x128xf32, #tpu.memory_space<vmem>>, vector<8x128xf32>
      tpu.vector_store %arg8[%c0_23, %c0_24], %36 {strides = array<i32>} : memref<8x128xf32, #tpu.memory_space<vmem>>, vector<8x128xf32>,
    } else {
    }
    %c1_i32 = arith.constant 1 : i32
    %3 = arith.muli %arg0, %c1_i32 : i32
    %4 = arith.addi %3, %arg1 : i32
    %c32_i32 = arith.constant 32 : i32
    %5 = arith.muli %4, %c32_i32 : i32
    %c16_i32 = arith.constant 16 : i32
    %6 = arith.subi %c16_i32, %5 : i32
    %7 = tpu.iota {dimensions = array<i32: 0>} : vector<32x128xi32>
    %8 = vector.broadcast %6 : i32 to vector<32x128xi32>
    %9 = arith.cmpi slt, %7, %8 : vector<32x128xi32>
    %c0 = arith.constant 0 : index
    %c0_1 = arith.constant 0 : index
    %10 = vector.load %arg2[%c0, %c0_1] : memref<32x128xf32, #tpu.memory_space<vmem>>, vector<32x128xf32>
    %c0_2 = arith.constant 0 : index
    %c0_3 = arith.constant 0 : index
    %11 = vector.load %arg3[%c0_2, %c0_3] : memref<32x128xf32, #tpu.memory_space<vmem>>, vector<32x128xf32>
    %12 = arith.subf %10, %11 : vector<32x128xf32>
    %13 = arith.mulf %12, %12 : vector<32x128xf32>
    %cst = arith.constant 0.000000e+00 : f32
    %14 = vector.broadcast %cst : f32 to vector<32x128xf32>
    %15 = arith.select %9, %13, %14 : vector<32x128xi1>, vector<32x128xf32>
    %c0_4 = arith.constant 0 : index
    %c0_5 = arith.constant 0 : index
    %16 = vector.load %arg7[%c0_4, %c0_5] : memref<8x128xf32, #tpu.memory_space<vmem>>, vector<8x128xf32>
    %17 = vector.shape_cast %15 : vector<32x128xf32> to vector<4x8x128xf32>
    %cst_6 = arith.constant dense<0.000000e+00> : vector<8x128xf32>
    %18 = vector.multi_reduction <add>, %17, %cst_6 [0] : vector<4x8x128xf32> to vector<8x128xf32>
    %19 = arith.addf %16, %18 : vector<8x128xf32>
    %c0_7 = arith.constant 0 : index
    %c0_8 = arith.constant 0 : index
    %20 = vector.load %arg7[%c0_7, %c0_8] : memref<8x128xf32, #tpu.memory_space<vmem>>, vector<8x128xf32>
    tpu.vector_store %arg7[%c0_7, %c0_8], %19 {strides = array<i32>} : memref<8x128xf32, #tpu.memory_space<vmem>>, vector<8x128xf32>,
    %c0_9 = arith.constant 0 : index
    %c0_10 = arith.constant 0 : index
    %21 = vector.load %arg4[%c0_9, %c0_10] : memref<32x128xf32, #tpu.memory_space<vmem>>, vector<32x128xf32>
    %22 = arith.subf %10, %21 : vector<32x128xf32>
    %23 = math.absf %22 : vector<32x128xf32>
    %cst_11 = arith.constant 0.000000e+00 : f32
    %24 = vector.broadcast %cst_11 : f32 to vector<32x128xf32>
    %25 = arith.select %9, %23, %24 : vector<32x128xi1>, vector<32x128xf32>
    %c0_12 = arith.constant 0 : index
    %c0_13 = arith.constant 0 : index
    %26 = vector.load %arg8[%c0_12, %c0_13] : memref<8x128xf32, #tpu.memory_space<vmem>>, vector<8x128xf32>
    %27 = vector.shape_cast %25 : vector<32x128xf32> to vector<4x8x128xf32>
    %cst_14 = arith.constant dense<0.000000e+00> : vector<8x128xf32>
    %28 = vector.multi_reduction <add>, %27, %cst_14 [0] : vector<4x8x128xf32> to vector<8x128xf32>
    %29 = arith.addf %26, %28 : vector<8x128xf32>
    %c0_15 = arith.constant 0 : index
    %c0_16 = arith.constant 0 : index
    %30 = vector.load %arg8[%c0_15, %c0_16] : memref<8x128xf32, #tpu.memory_space<vmem>>, vector<8x128xf32>
    tpu.vector_store %arg8[%c0_15, %c0_16], %29 {strides = array<i32>} : memref<8x128xf32, #tpu.memory_space<vmem>>, vector<8x128xf32>,
    %c0_i32_17 = arith.constant 0 : i32
    %31 = arith.cmpi eq, %arg1, %c0_i32_17 : i32
    %32 = arith.extui %31 : i1 to i32
    %c0_i32_18 = arith.constant 0 : i32
    %33 = arith.cmpi ne, %32, %c0_i32_18 : i32
    scf.if %33 {
      %c0_19 = arith.constant 0 : index
      %c0_20 = arith.constant 0 : index
      %34 = vector.load %arg7[%c0_19, %c0_20] : memref<8x128xf32, #tpu.memory_space<vmem>>, vector<8x128xf32>
      %35 = vector.shape_cast %34 : vector<8x128xf32> to vector<1x8x128xf32>
      %cst_21 = arith.constant dense<0.000000e+00> : vector<1xf32>
      %36 = vector.multi_reduction <add>, %35, %cst_21 [1, 2] : vector<1x8x128xf32> to vector<1xf32>
      %37 = vector.shape_cast %36 : vector<1xf32> to vector<1x1x1xf32>
      %38 = vector.extract %37[0, 0, 0] : f32 from vector<1x1x1xf32>
      %39 = vector.broadcast %38 : f32 to vector<1x1xf32>
      %c0_22 = arith.constant 0 : index
      %c0_23 = arith.constant 0 : index
      %40 = vector.load %arg5[%c0_22, %c0_23] : memref<1x1xf32, #tpu.memory_space<vmem>>, vector<1x1xf32>
      tpu.vector_store %arg5[%c0_22, %c0_23], %39 {strides = array<i32>} : memref<1x1xf32, #tpu.memory_space<vmem>>, vector<1x1xf32>,
      %c0_24 = arith.constant 0 : index
      %c0_25 = arith.constant 0 : index
      %41 = vector.load %arg8[%c0_24, %c0_25] : memref<8x128xf32, #tpu.memory_space<vmem>>, vector<8x128xf32>
      %42 = vector.shape_cast %41 : vector<8x128xf32> to vector<1x8x128xf32>
      %cst_26 = arith.constant dense<0.000000e+00> : vector<1xf32>
      %43 = vector.multi_reduction <add>, %42, %cst_26 [1, 2] : vector<1x8x128xf32> to vector<1xf32>
      %44 = vector.shape_cast %43 : vector<1xf32> to vector<1x1x1xf32>
      %45 = vector.extract %44[0, 0, 0] : f32 from vector<1x1x1xf32>
      %46 = vector.broadcast %45 : f32 to vector<1x1xf32>
      %c0_27 = arith.constant 0 : index
      %c0_28 = arith.constant 0 : index
      %47 = vector.load %arg6[%c0_27, %c0_28] : memref<1x1xf32, #tpu.memory_space<vmem>>, vector<1x1xf32>
      tpu.vector_store %arg6[%c0_27, %c0_28], %46 {strides = array<i32>} : memref<1x1xf32, #tpu.memory_space<vmem>>, vector<1x1xf32>,
    } else {
    }
    return
  }
  func.func @transform_0(%arg0: i32, %arg1: i32) -> (i32, i32) {
    %c1_i32 = arith.constant 1 : i32
    %0 = arith.muli %arg0, %c1_i32 : i32
    %1 = arith.addi %0, %arg1 : i32
    %c0_i32 = arith.constant 0 : i32
    %2 = arith.minsi %1, %c0_i32 : i32
    %c0_i32_0 = arith.constant 0 : i32
    %c0_i32_1 = arith.constant 0 : i32
    return %2, %c0_i32_0 : i32, i32
  }
  func.func @transform_1(%arg0: i32, %arg1: i32) -> (i32, i32) {
    %c1_i32 = arith.constant 1 : i32
    %0 = arith.muli %arg0, %c1_i32 : i32
    %1 = arith.addi %0, %arg1 : i32
    %c0_i32 = arith.constant 0 : i32
    %2 = arith.minsi %1, %c0_i32 : i32
    %c0_i32_0 = arith.constant 0 : i32
    %c0_i32_1 = arith.constant 0 : i32
    return %2, %c0_i32_0 : i32, i32
  }
  func.func @transform_2(%arg0: i32, %arg1: i32) -> (i32, i32) {
    %c1_i32 = arith.constant 1 : i32
    %0 = arith.muli %arg0, %c1_i32 : i32
    %1 = arith.addi %0, %arg1 : i32
    %c0_i32 = arith.constant 0 : i32
    %2 = arith.minsi %1, %c0_i32 : i32
    %c0_i32_0 = arith.constant 0 : i32
    %c0_i32_1 = arith.constant 0 : i32
    return %2, %c0_i32_0 : i32, i32
  }
  func.func @transform_3(%arg0: i32, %arg1: i32) -> (i32, i32) {
    %c0_i32 = arith.constant 0 : i32
    %c0_i32_0 = arith.constant 0 : i32
    return %arg0, %c0_i32 : i32, i32
  }
  func.func @transform_4(%arg0: i32, %arg1: i32) -> (i32, i32) {
    %c0_i32 = arith.constant 0 : i32
    %c0_i32_0 = arith.constant 0 : i32
    return %arg0, %c0_i32 : i32, i32
  }
}

</mosaic_0001>

<bundles_post_ra>
// kernel: tpu_custom_call.1
= control target key start
LH: loop header
LB: loop body
LE: loop exit
PB: predicated region body
PF: predicated region fallthrough
CT: control target
= control target key end

     0   :  { %10 = vsyncpa [#allocation5], 0  ;;  %s470_s0 = inlined_call_operand.hbm [shape: f32[16,128], index: 0, kind: input, shape index: {}]   ;;  %s471_s1 = inlined_call_operand.hbm [shape: f32[16,128], index: 1, kind: input, shape index: {}]   ;;  %s472_s2 = inlined_call_operand.hbm [shape: f32[16,128], index: 2, kind: input, shape index: {}]   ;;  %s473_s3 = inlined_call_operand.hbm [shape: f32[1,1], index: 3, kind: output, shape index: {0}]   ;;  %s474_s4 = inlined_call_operand.hbm [shape: f32[1,1], index: 4, kind: output, shape index: {1}]  }
   0x1   :  { %11 = vsyncpa [#allocation8], 0 }
   0x2   :  { %12 = vsyncpa [#allocation6], 0 }
   0x3   :  { %13 = vsyncpa [#allocation12], 0 }
   0x4   :  { %24 = vsyncadd [#allocation5], 256  ;;  %s367_s15 = smov [#allocation4]   ;;  %s249_s19 = scalar_lea.hbm %s470_s0, 256 }
   0x5   :  { %s29_s16 = sshll.u32 %s367_s15, 4  ;;  %p250_p0 = scmp.ne.s32.totalorder %s470_s0, %s249_s19  ;;  %s30_s16 = int_to_ptr.vmem [resolvable:$true] %s29_s16 }
   0x6   :  { %p253_p1 = scmp.lt.u32.totalorder %s249_s19, %s470_s0 }
   0x8   :  { %p255_p2 = pnand %p253_p1, %p250_p0 }
   0xa   :  { %258 = shalt.err (!%p255_p2)
}
   0xb   :  { %s259_s24 = scalar_lea.vmem %s30_s16, 256  ;;  %s263_s25 = scalar_lea.vmem %s30_s16, 512 }
   0xc   :  { %p260_p3 = scmp.ne.s32.totalorder %s30_s16, %s259_s24  ;;  %p264_p4 = scmp.lt.s32.totalorder %s30_s16, %s30_s16 }
   0xd   :  { %p265_p5 = scmp.lt.s32.totalorder %s263_s25, %s259_s24 }
   0xf   :  { %p266_p6 = por %p265_p5, %p264_p4 }
  0x11   :  { %p267_p7 = pnand %p266_p6, %p260_p3 }
  0x13   :  { %270 = shalt.err (!%p267_p7)
}
  0x14   :  { %s368_s26 = smov 128   ;;  %s369_s27 = smov 8  }
  0x15   :  { %35 = dma.hbm_to_vmem [thread:$0]  %s470_s0, 256, %s30_s16, [#allocation5], %s368_s26, %s368_s26, %s369_s27  }
  0x16   :  { %46 = vsyncadd [#allocation8], 256  ;;  %s370_s30 = smov [#allocation7]   ;;  %s271_s8 = scalar_lea.hbm %s471_s1, 256 }
  0x17   :  { %s51_s5 = sshll.u32 %s370_s30, 4  ;;  %p272_p8 = scmp.ne.s32.totalorder %s471_s1, %s271_s8  ;;  %s52_s5 = int_to_ptr.vmem [resolvable:$true] %s51_s5 }
  0x18   :  { %p275_p9 = scmp.lt.u32.totalorder %s271_s8, %s471_s1 }
  0x1a   :  { %p277_p10 = pnand %p275_p9, %p272_p8 }
  0x1c   :  { %280 = shalt.err (!%p277_p10)
}
  0x1d   :  { %s281_s13 = scalar_lea.vmem %s52_s5, 256  ;;  %s285_s0 = scalar_lea.vmem %s52_s5, 512 }
  0x1e   :  { %p282_p11 = scmp.ne.s32.totalorder %s52_s5, %s281_s13  ;;  %p286_p12 = scmp.lt.s32.totalorder %s52_s5, %s52_s5 }
  0x1f   :  { %p287_p13 = scmp.lt.s32.totalorder %s285_s0, %s281_s13 }
  0x21   :  { %p288_p0 = por %p287_p13, %p286_p12 }
  0x23   :  { %p289_p1 = pnand %p288_p0, %p282_p11 }
  0x25   :  { %292 = shalt.err (!%p289_p1)
}
  0x26   :  { %57 = dma.hbm_to_vmem [thread:$0]  %s471_s1, 256, %s52_s5, [#allocation8], %s368_s26, %s368_s26, %s369_s27  }
  0x27   :  { %68 = vsyncadd [#allocation8], 256  ;;  %s371_s16 = smov [#allocation9]   ;;  %s293_s20 = scalar_lea.hbm %s472_s2, 256 }
  0x28   :  { %s73_s17 = sshll.u32 %s371_s16, 4  ;;  %p294_p2 = scmp.ne.s32.totalorder %s472_s2, %s293_s20  ;;  %s74_s17 = int_to_ptr.vmem [resolvable:$true] %s73_s17 }
  0x29   :  { %p297_p3 = scmp.lt.u32.totalorder %s293_s20, %s472_s2 }
  0x2b   :  { %p299_p4 = pnand %p297_p3, %p294_p2 }
  0x2d   :  { %302 = shalt.err (!%p299_p4)
}
  0x2e   :  { %s303_s25 = scalar_lea.vmem %s74_s17, 256  ;;  %s307_s1 = scalar_lea.vmem %s74_s17, 512 }
  0x2f   :  { %p304_p5 = scmp.ne.s32.totalorder %s74_s17, %s303_s25  ;;  %p308_p6 = scmp.lt.s32.totalorder %s74_s17, %s74_s17 }
  0x30   :  { %p309_p7 = scmp.lt.s32.totalorder %s307_s1, %s303_s25 }
  0x32   :  { %p310_p8 = por %p309_p7, %p308_p6 }
  0x34   :  { %p311_p9 = pnand %p310_p8, %p304_p5 }
  0x36   :  { %314 = shalt.err (!%p311_p9)
}
  0x37   :  { %79 = dma.hbm_to_vmem [thread:$0]  %s472_s2, 256, %s74_s17, [#allocation8], %s368_s26, %s368_s26, %s369_s27  }
  0x38   :  { %359 = dma.done.wait [#allocation5], 512  }
  0x39   :  { %360 = vsyncadd [#allocation5], 4294966784 }
  0x3a   :  { %361 = dma.done.wait [#allocation8], 1024  }
  0x3b   :  { %362 = vsyncadd [#allocation8], 4294966272  ;;  %v126_v0 = vld [vmem:[#allocation4] sm:$0xff]  ;;  %v127_v1 = vld [vmem:[#allocation4 + $0x8] sm:$0xff]  ;;  %s372_s2 = smov [#allocation10]   ;;  %vm188_vm0 = vcmask 0  }
  0x3c   :  { %v130_v2 = vld [vmem:[#allocation7] sm:$0xff]  ;;  %v131_v3 = vld [vmem:[#allocation7 + $0x8] sm:$0xff]  ;;  %s208_s26 = sshll.u32 %s372_s2, 4  ;;  %s373_s30 = smov [#allocation11]   ;;  %s209_s26 = int_to_ptr.vmem [resolvable:$true] %s208_s26 }
  0x3d   :  { %v134_v4 = vsub.f32 %v126_v0, %v130_v2  ;;  %v152_v5 = vld [vmem:[#allocation9] sm:$0xff]  ;;  %v153_v6 = vld [vmem:[#allocation9 + $0x8] sm:$0xff]  ;;  %v135_v7 = vsub.f32 %v127_v1, %v131_v3  ;;  %s218_s5 = sshll.u32 %s373_s30, 4  ;;  %s315_s6 = scalar_lea.vmem %s209_s26, 16  ;;  %s219_s5 = int_to_ptr.vmem [resolvable:$true] %s218_s5 }
  0x3e   :  { %v156_v8 = vsub.f32 %v126_v0, %v152_v5  ;;  %v157_v9 = vsub.f32 %v127_v1, %v153_v6  ;;  %p316_p10 = scmp.ne.s32.totalorder %s209_s26, %s315_s6  ;;  %s319_s7 = scalar_lea.vmem %s209_s26, 32 }
  0x3f   :  { %v138_v10 = vmul.f32 %v134_v4, %v134_v4  ;;  %v139_v11 = vmul.f32 %v135_v7, %v135_v7  ;;  %p320_p11 = scmp.lt.s32.totalorder %s209_s26, %s209_s26  ;;  %p321_p12 = scmp.lt.s32.totalorder %s319_s7, %s315_s6 }
  0x40   :  { %v160_v12 = vand.u32 2147483647, %v156_v8  ;;  %v161_v13 = vand.u32 2147483647, %v157_v9 }
  0x41   :  { %v147_v14 = vadd.f32 %v139_v11, %v138_v10  ;;  %p322_p13 = por %p321_p12, %p320_p11 }
  0x42   :  { %v169_v15 = vadd.f32 %v161_v13, %v160_v12 }
  0x43   :  { %178 = vadd.xlane.f32.xlu0 %v147_v14  ;;  %p323_p0 = pnand %p322_p13, %p316_p10 }
  0x47   :  { %191 = vadd.xlane.f32.xlu0 %v169_v15 }
  0xd0   :  { %v179_v16 = vpop.xlane.xlu0 %178 }
  0xd1   :  { %v180_v17 = vrot.slane %v179_v16, 4 }
  0xd3   :  { %v181_v18 = vadd.f32 %v180_v17, %v179_v16 }
  0xd4   :  { %v192_v19 = vpop.xlane.xlu0 %191 }
  0xd5   :  { %v182_v20 = vrot.slane %v181_v18, 2  ;;  %v193_v21 = vrot.slane %v192_v19, 4 }
  0xd7   :  { %v194_v22 = vadd.f32 %v193_v21, %v192_v19  ;;  %v183_v23 = vadd.f32 %v182_v20, %v181_v18 }
  0xd9   :  { %v195_v24 = vrot.slane %v194_v22, 2  ;;  %v184_v25 = vrot.slane %v183_v23, 1 }
  0xdb   :  { %v196_v26 = vadd.f32 %v195_v24, %v194_v22  ;;  %v185_v27 = vadd.f32 %v184_v25, %v183_v23 }
  0xdd   :  { %238 = vpush %v185_v27  ;;  %v197_v28 = vrot.slane %v196_v26, 1 }
  0xdf   :  { %v198_v29 = vadd.f32 %v197_v28, %v196_v26 }
  0xe1   :  { %240 = vpush %v198_v29 }
 0x10e   :  { %s239_s27 = spop %238 }
 0x10f   :  { %v187_v30 = vstv %s239_s27 }
 0x110   :  { %189 = vst.msk [vmem:[#allocation10] sm:$0x1] %vm188_vm0, %v187_v30 }
 0x111   :  { %326 = shalt.err (!%p323_p0)
}
 0x112   :  { %s327_s10 = scalar_lea.hbm %s473_s3, 16 }
 0x113   :  { %p328_p1 = scmp.ne.s32.totalorder %s473_s3, %s327_s10  ;;  %p331_p2 = scmp.lt.u32.totalorder %s327_s10, %s473_s3 }
 0x115   :  { %p333_p3 = pnand %p331_p2, %p328_p1 }
 0x117   :  { %336 = shalt.err (!%p333_p3)
}
 0x118   :  { %211 = dma.vmem_to_hbm [thread:$0]  %s209_s26, 16, %s473_s3, [#allocation6]  }
 0x119   :  { %s241_s16 = spop %240  ;;  %s337_s17 = scalar_lea.vmem %s219_s5, 16 }
 0x11a   :  { %v200_v31 = vstv %s241_s16  ;;  %p338_p4 = scmp.ne.s32.totalorder %s219_s5, %s337_s17  ;;  %s341_s18 = scalar_lea.vmem %s219_s5, 32 }
 0x11b   :  { %201 = vst.msk [vmem:[#allocation11] sm:$0x1] %vm188_vm0, %v200_v31  ;;  %p342_p5 = scmp.lt.s32.totalorder %s219_s5, %s219_s5  ;;  %p343_p6 = scmp.lt.s32.totalorder %s341_s18, %s337_s17 }
 0x11d   :  { %p344_p7 = por %p343_p6, %p342_p5 }
 0x11f   :  { %p345_p8 = pnand %p344_p7, %p338_p4 }
 0x121   :  { %348 = shalt.err (!%p345_p8)
}
 0x122   :  { %s349_s21 = scalar_lea.hbm %s474_s4, 16 }
 0x123   :  { %p350_p9 = scmp.ne.s32.totalorder %s474_s4, %s349_s21  ;;  %p353_p10 = scmp.lt.u32.totalorder %s349_s21, %s474_s4 }
 0x125   :  { %p355_p11 = pnand %p353_p10, %p350_p9 }
 0x127   :  { %358 = shalt.err (!%p355_p11)
}
 0x128   :  { %221 = dma.vmem_to_hbm [thread:$0]  %s219_s5, 16, %s474_s4, [#allocation12]  }
 0x129   :  { %363 = dma.done.wait [#allocation6], 16  }
 0x12a   :  { %364 = vsyncadd [#allocation6], 4294967280 }
 0x12b   :  { %365 = dma.done.wait [#allocation12], 16  }
 0x12c   :  { %366 = vsyncadd [#allocation12], 4294967280 }
 0x12d   :  { %228 = vsyncpa [#allocation5], 1 }
 0x12e   :  { %229 = vsyncpa [#allocation8], 1 }
 0x12f   :  { %230 = vsyncpa [#allocation6], 1 }
 0x130   :  { %231 = vsyncpa [#allocation12], 1 }

</bundles_post_ra>
